<compile_context>
chip_gen: v6e
topology: v6e:2x2x1
jax: 0.10.0
libtpu: 0.0.40
codegen_flags: <defaults>
</compile_context>

<pallas_src>
import math

import jax
import jax.numpy as jnp
from jax.experimental import pallas as pl
from jax.experimental.pallas import tpu as pltpu

# Module constants (deterministic, defined in-script).
SCALE_FACTOR = math.sqrt(128.0)   # the PyTorch module *multiplies* by sqrt(128)
DROPOUT_P = 0.1                   # dropout_p from the original script


def attn_kernel(q_ref, k_ref, v_ref, keep_ref, o_ref):
    q = q_ref[...]        # (B, Q, H) f32
    k = k_ref[...]        # (B, V, H) f32
    v = v_ref[...]        # (B, V, H) f32
    keep = keep_ref[...]  # (B, Q, V) f32, values in {0.0, 1.0}

    # qk = query @ key^T (batched, no explicit transpose), then scale by *sqrt(128)*
    # exactly as the reference module does (it multiplies, not divides).
    qk = jnp.einsum('bqd,bkd->bqk', q, k,
                    preferred_element_type=jnp.float32) * SCALE_FACTOR  # (B, Q, V)

    # Numerically stable softmax over the last dim.
    m = jnp.max(qk, axis=-1, keepdims=True)
    e = jnp.exp(qk - m)
    denom = jnp.sum(e, axis=-1, keepdims=True)                          # (B, Q, 1)

    # Fold the softmax normalization and the dropout survivor scale 1/(1-p) into one
    # tiny (B, Q, 1) reciprocal, then apply it plus the 0/1 keep mask with multiplies
    # only (no full-tile divide, no extra intermediate p tile).
    inv = (1.0 / (1.0 - DROPOUT_P)) / denom                             # (B, Q, 1)
    p_drop = e * inv * keep                                             # (B, Q, V)

    # output = dropout(softmax(scaled_qk)) @ value
    o_ref[...] = jnp.einsum('bqk,bkd->bqd', p_drop, v,
                            preferred_element_type=jnp.float32)


def attention(query, key, value, dropout_key):
    B, Q, H = query.shape
    _, V, _ = key.shape

    # Training-mode dropout: drop with prob p (survivors scaled inside the kernel).
    keep_mask = (jax.random.uniform(dropout_key, (B, Q, V), dtype=jnp.float32)
                 >= DROPOUT_P).astype(jnp.float32)

    return pl.pallas_call(
        attn_kernel,
        out_shape=jax.ShapeDtypeStruct((B, Q, H), jnp.float32),
        grid=(1,),  # single invocation: whole batch resident in VMEM
        in_specs=[
            pl.BlockSpec((B, Q, H), lambda i: (0, 0, 0)),
            pl.BlockSpec((B, V, H), lambda i: (0, 0, 0)),
            pl.BlockSpec((B, V, H), lambda i: (0, 0, 0)),
            pl.BlockSpec((B, Q, V), lambda i: (0, 0, 0)),
        ],
        out_specs=pl.BlockSpec((B, Q, H), lambda i: (0, 0, 0)),
        compiler_params=pltpu.CompilerParams(
            dimension_semantics=("arbitrary",)),
    )(query, key, value, keep_mask)


if __name__ == "__main__":
    # Small shapes consistent with the module: batch=2, q_size=8, v_size=128, hidden=128.
    batch_size, q_size, v_size, hidden_size = 2, 8, 128, 128

    root = jax.random.PRNGKey(0)
    k_q, k_k, k_v, k_drop = jax.random.split(root, 4)
    query = jax.random.normal(k_q, (batch_size, q_size, hidden_size), dtype=jnp.float32)
    key = jax.random.normal(k_k, (batch_size, v_size, hidden_size), dtype=jnp.float32)
    value = jax.random.normal(k_v, (batch_size, v_size, hidden_size), dtype=jnp.float32)

    out = attention(query, key, value, dropout_key=k_drop)
    jax.block_until_ready(out)

    assert out.shape == (batch_size, q_size, hidden_size)
    assert out.dtype == jnp.float32
    assert bool(jnp.all(jnp.isfinite(out)))
    print("KERNEL_OK")
</pallas_src>

<mosaic_0001>
module attributes {stable_mosaic.version = 11 : i64} {
  func.func @attn_kernel(%arg0: i32, %arg1: memref<2x8x128xf32, #tpu.memory_space<vmem>>, %arg2: memref<2x128x128xf32, #tpu.memory_space<vmem>>, %arg3: memref<2x128x128xf32, #tpu.memory_space<vmem>>, %arg4: memref<2x8x128xf32, #tpu.memory_space<vmem>>, %arg5: memref<2x8x128xf32, #tpu.memory_space<vmem>>) attributes {dimension_semantics = [#tpu.dimension_semantics<arbitrary>], iteration_bounds = array<i64: 1>, scalar_prefetch = 0 : i64, scratch_operands = 0 : i64, tpu.core_type = #tpu.core_type<tc>, window_params = [{pipeline_mode = #tpu.pipeline_mode<synchronous>, transform_indices = @transform_0, window_bounds = array<i64: 2, 8, 128>}, {pipeline_mode = #tpu.pipeline_mode<synchronous>, transform_indices = @transform_1, window_bounds = array<i64: 2, 128, 128>}, {pipeline_mode = #tpu.pipeline_mode<synchronous>, transform_indices = @transform_2, window_bounds = array<i64: 2, 128, 128>}, {pipeline_mode = #tpu.pipeline_mode<synchronous>, transform_indices = @transform_3, window_bounds = array<i64: 2, 8, 128>}, {pipeline_mode = #tpu.pipeline_mode<synchronous>, transform_indices = @transform_4, window_bounds = array<i64: 2, 8, 128>}]} {
    %c0 = arith.constant 0 : index
    %c0_0 = arith.constant 0 : index
    %c0_1 = arith.constant 0 : index
    %0 = vector.load %arg1[%c0, %c0_0, %c0_1] : memref<2x8x128xf32, #tpu.memory_space<vmem>>, vector<2x8x128xf32>
    %c0_2 = arith.constant 0 : index
    %c0_3 = arith.constant 0 : index
    %c0_4 = arith.constant 0 : index
    %1 = vector.load %arg2[%c0_2, %c0_3, %c0_4] : memref<2x128x128xf32, #tpu.memory_space<vmem>>, vector<2x128x128xf32>
    %c0_5 = arith.constant 0 : index
    %c0_6 = arith.constant 0 : index
    %c0_7 = arith.constant 0 : index
    %2 = vector.load %arg3[%c0_5, %c0_6, %c0_7] : memref<2x128x128xf32, #tpu.memory_space<vmem>>, vector<2x128x128xf32>
    %c0_8 = arith.constant 0 : index
    %c0_9 = arith.constant 0 : index
    %c0_10 = arith.constant 0 : index
    %3 = vector.load %arg4[%c0_8, %c0_9, %c0_10] : memref<2x8x128xf32, #tpu.memory_space<vmem>>, vector<2x8x128xf32>
    "tpu.trace_start"() <{level = 10 : i32, message = "bqd,bkd->bqk"}> : () -> ()
    %cst = arith.constant dense<0.000000e+00> : vector<2x8x128xf32>
    %4 = tpu.matmul %0, %1, %cst {dimension_numbers = #tpu.dot_dimension_numbers<[2], [2], [1], [1], [0, 0, 0, 1, 1, 1], [0], [0]>} : vector<2x8x128xf32>, vector<2x128x128xf32>, vector<2x8x128xf32> -> vector<2x8x128xf32>
    "tpu.trace_stop"() : () -> ()
    %cst_11 = arith.constant 11.3137083 : f32
    %5 = vector.broadcast %cst_11 : f32 to vector<2x8x128xf32>
    %6 = arith.mulf %4, %5 : vector<2x8x128xf32>
    %cst_12 = arith.constant dense<0xFF800000> : vector<2x8xf32>
    %7 = vector.multi_reduction <maximumf>, %6, %cst_12 [2] : vector<2x8x128xf32> to vector<2x8xf32>
    %8 = vector.shape_cast %7 : vector<2x8xf32> to vector<2x8x1xf32>
    %9 = vector.broadcast %8 : vector<2x8x1xf32> to vector<2x8x128xf32>
    %10 = arith.subf %6, %9 : vector<2x8x128xf32>
    %11 = math.exp %10 : vector<2x8x128xf32>
    %cst_13 = arith.constant dense<0.000000e+00> : vector<2x8xf32>
    %12 = vector.multi_reduction <add>, %11, %cst_13 [2] : vector<2x8x128xf32> to vector<2x8xf32>
    %13 = vector.shape_cast %12 : vector<2x8xf32> to vector<2x8x1xf32>
    %cst_14 = arith.constant 1.11111116 : f32
    %14 = vector.broadcast %cst_14 : f32 to vector<2x8x1xf32>
    %15 = arith.divf %14, %13 : vector<2x8x1xf32>
    %16 = vector.broadcast %15 : vector<2x8x1xf32> to vector<2x8x128xf32>
    %17 = arith.mulf %11, %16 : vector<2x8x128xf32>
    %18 = arith.mulf %17, %3 : vector<2x8x128xf32>
    "tpu.trace_start"() <{level = 10 : i32, message = "bqk,bkd->bqd"}> : () -> ()
    %cst_15 = arith.constant dense<0.000000e+00> : vector<2x8x128xf32>
    %19 = tpu.matmul %18, %2, %cst_15 {dimension_numbers = #tpu.dot_dimension_numbers<[2], [1], [1], [2], [0, 0, 0, 1, 1, 2], [0], [0]>} : vector<2x8x128xf32>, vector<2x128x128xf32>, vector<2x8x128xf32> -> vector<2x8x128xf32>
    "tpu.trace_stop"() : () -> ()
    %c0_16 = arith.constant 0 : index
    %c0_17 = arith.constant 0 : index
    %c0_18 = arith.constant 0 : index
    %20 = vector.load %arg5[%c0_16, %c0_17, %c0_18] : memref<2x8x128xf32, #tpu.memory_space<vmem>>, vector<2x8x128xf32>
    tpu.vector_store %arg5[%c0_16, %c0_17, %c0_18], %19 {strides = array<i32>} : memref<2x8x128xf32, #tpu.memory_space<vmem>>, vector<2x8x128xf32>,
    return
  }
  func.func @transform_0(%arg0: i32) -> (i32, i32, i32) {
    %c0_i32 = arith.constant 0 : i32
    %c0_i32_0 = arith.constant 0 : i32
    %c0_i32_1 = arith.constant 0 : i32
    %c0_i32_2 = arith.constant 0 : i32
    return %c0_i32, %c0_i32_0, %c0_i32_1 : i32, i32, i32
  }
  func.func @transform_1(%arg0: i32) -> (i32, i32, i32) {
    %c0_i32 = arith.constant 0 : i32
    %c0_i32_0 = arith.constant 0 : i32
    %c0_i32_1 = arith.constant 0 : i32
    %c0_i32_2 = arith.constant 0 : i32
    return %c0_i32, %c0_i32_0, %c0_i32_1 : i32, i32, i32
  }
  func.func @transform_2(%arg0: i32) -> (i32, i32, i32) {
    %c0_i32 = arith.constant 0 : i32
    %c0_i32_0 = arith.constant 0 : i32
    %c0_i32_1 = arith.constant 0 : i32
    %c0_i32_2 = arith.constant 0 : i32
    return %c0_i32, %c0_i32_0, %c0_i32_1 : i32, i32, i32
  }
  func.func @transform_3(%arg0: i32) -> (i32, i32, i32) {
    %c0_i32 = arith.constant 0 : i32
    %c0_i32_0 = arith.constant 0 : i32
    %c0_i32_1 = arith.constant 0 : i32
    %c0_i32_2 = arith.constant 0 : i32
    return %c0_i32, %c0_i32_0, %c0_i32_1 : i32, i32, i32
  }
  func.func @transform_4(%arg0: i32) -> (i32, i32, i32) {
    %c0_i32 = arith.constant 0 : i32
    %c0_i32_0 = arith.constant 0 : i32
    %c0_i32_1 = arith.constant 0 : i32
    %c0_i32_2 = arith.constant 0 : i32
    return %c0_i32, %c0_i32_0, %c0_i32_1 : i32, i32, i32
  }
}

</mosaic_0001>

<bundles_post_ra>
// kernel: tpu_custom_call.1
= control target key start
LH: loop header
LB: loop body
LE: loop exit
PB: predicated region body
PF: predicated region fallthrough
CT: control target
= control target key end

     0   :  { %9 = vsyncpa [#allocation3], 0  ;;  %s943_s0 = inlined_call_operand.hbm [shape: f32[2,8,128], index: 0, kind: input, shape index: {}]   ;;  %s944_s1 = inlined_call_operand.hbm [shape: f32[2,128,128], index: 1, kind: input, shape index: {}]   ;;  %s945_s2 = inlined_call_operand.hbm [shape: f32[2,128,128], index: 2, kind: input, shape index: {}]   ;;  %s946_s3 = inlined_call_operand.hbm [shape: f32[2,8,128], index: 3, kind: input, shape index: {}]   ;;  %s947_s4 = inlined_call_operand.hbm [shape: f32[2,8,128], index: 4, kind: output, shape index: {}]  }
   0x1   :  { %10 = vsyncpa [#allocation6], 0 }
   0x2   :  { %11 = vsyncpa [#allocation9], 0 }
   0x3   :  { %12 = vsyncpa [#allocation4], 0  ;;  %s799_s15 = smov [#allocation5]   ;;  %s800_s17 = smov [#allocation2]  }
   0x4   :  { %s30_s16 = sshll.u32 %s799_s15, 4  ;;  %s18_s18 = sshll.u32 %s800_s17, 4  ;;  %s31_s16 = int_to_ptr.vmem [resolvable:$true] %s30_s16  ;;  %s19_s18 = int_to_ptr.vmem [resolvable:$true] %s18_s18 }
   0x5   :  { %s699_s19 = scalar_lea.vmem %s31_s16, 4096  ;;  %p704_p1 = scmp.lt.s32.totalorder %s31_s16, %s31_s16 }
   0x6   :  { %p700_p0 = scmp.ne.s32.totalorder %s31_s16, %s699_s19  ;;  %p705_p2 = scmp.lt.s32.totalorder %s699_s19, %s699_s19 }
   0x8   :  { %p706_p3 = por %p705_p2, %p704_p1 }
   0xa   :  { %p707_p4 = pnand %p706_p3, %p700_p0 }
   0xc   :  { %710 = shalt.err (!%p707_p4)
}
   0xd   :  { %s801_s20 = smov 128   ;;  %s802_s21 = smov 8  }
   0xe   :  { %36 = dma.hbm_to_vmem [thread:$0]  %s944_s1, 4096, %s31_s16, [#allocation6], %s801_s20, %s801_s20, %s802_s21  }
   0xf   :  { %s719_s24 = scalar_lea.vmem %s19_s18, 256  ;;  %p724_p6 = scmp.lt.s32.totalorder %s19_s18, %s19_s18 }
  0x10   :  { %p720_p5 = scmp.ne.s32.totalorder %s19_s18, %s719_s24  ;;  %p725_p7 = scmp.lt.s32.totalorder %s719_s24, %s719_s24 }
  0x12   :  { %p726_p8 = por %p725_p7, %p724_p6 }
  0x14   :  { %p727_p9 = pnand %p726_p8, %p720_p5 }
  0x16   :  { %730 = shalt.err (!%p727_p9)
}
  0x17   :  { %24 = dma.hbm_to_vmem [thread:$0]  %s943_s0, 256, %s19_s18, [#allocation3], %s801_s20, %s801_s20, %s802_s21  }
  0x18   :  { %s803_s27 = smov [#allocation7]   ;;  %s804_s29 = smov [#allocation8]  }
  0x19   :  { %s42_s28 = sshll.u32 %s803_s27, 4  ;;  %s54_s30 = sshll.u32 %s804_s29, 4  ;;  %s43_s28 = int_to_ptr.vmem [resolvable:$true] %s42_s28  ;;  %s55_s30 = int_to_ptr.vmem [resolvable:$true] %s54_s30 }
  0x1a   :  { %s739_s1 = scalar_lea.vmem %s43_s28, 4096  ;;  %p744_p11 = scmp.lt.s32.totalorder %s43_s28, %s43_s28 }
  0x1b   :  { %p740_p10 = scmp.ne.s32.totalorder %s43_s28, %s739_s1  ;;  %p745_p12 = scmp.lt.s32.totalorder %s739_s1, %s739_s1 }
  0x1d   :  { %p746_p13 = por %p745_p12, %p744_p11 }
  0x1f   :  { %p747_p0 = pnand %p746_p13, %p740_p10 }
  0x21   :  { %750 = shalt.err (!%p747_p0)
}
  0x22   :  { %48 = dma.hbm_to_vmem [thread:$0]  %s945_s2, 4096, %s43_s28, [#allocation6], %s801_s20, %s801_s20, %s802_s21  }
  0x23   :  { %s759_s0 = scalar_lea.vmem %s55_s30, 256  ;;  %p764_p2 = scmp.lt.s32.totalorder %s55_s30, %s55_s30 }
  0x24   :  { %p760_p1 = scmp.ne.s32.totalorder %s55_s30, %s759_s0  ;;  %p765_p3 = scmp.lt.s32.totalorder %s759_s0, %s759_s0 }
  0x26   :  { %p766_p4 = por %p765_p3, %p764_p2 }
  0x28   :  { %p767_p5 = pnand %p766_p4, %p760_p1 }
  0x2a   :  { %770 = shalt.err (!%p767_p5)
}
  0x2b   :  { %60 = dma.hbm_to_vmem [thread:$0]  %s946_s3, 256, %s55_s30, [#allocation9], %s801_s20, %s801_s20, %s802_s21  }
  0x2c   :  { %791 = dma.done.wait [#allocation3], 256  }
  0x2d   :  { %792 = vsyncadd [#allocation3], 4294967040 }
  0x2e   :  { %793 = dma.done.wait [#allocation6], 8192  }
  0x2f   :  { %794 = vsyncadd [#allocation6], 4294959104 }
  0x30   :  { %795 = dma.done.wait [#allocation9], 256  }
  0x31   :  { %796 = vsyncadd [#allocation9], 4294967040  ;;  %v805_v0 = vmov 0.0   ;;  %vm806_vm0 = vmmov 0   ;;  %v90_v1 = vld [vmem:[#allocation5 + $0x78] sm:$0xff]  ;;  %v89_v3 = vld [vmem:[#allocation5 + $0x70] sm:$0xff] }
  0x32   :  { %534 = vmatprep.subr.mxu0 %v805_v0  ;;  %569 = vmatprep.subr.mxu1 %v805_v0  ;;  %v106_v2 = vld [vmem:[#allocation5 + $0xf8] sm:$0xff]  ;;  %v105_v4 = vld [vmem:[#allocation5 + $0xf0] sm:$0xff]  ;;  %v88_v5 = vld [vmem:[#allocation5 + $0x68] sm:$0xff]  ;;  %s807_s2 = smov [#allocation10]  }
  0x33   :  { %566 = vmatprep.mubr.msk.f32.mxu0 %vm806_vm0, %v805_v0  ;;  %601 = vmatprep.mubr.msk.f32.mxu1 %vm806_vm0, %v805_v0  ;;  %v104_v6 = vld [vmem:[#allocation5 + $0xe8] sm:$0xff]  ;;  %v87_v7 = vld [vmem:[#allocation5 + $0x60] sm:$0xff]  ;;  %v86_v9 = vld [vmem:[#allocation5 + $0x58] sm:$0xff]  ;;  %s452_s3 = sshll.u32 %s807_s2, 4  ;;  %s453_s3 = int_to_ptr.vmem [resolvable:$true] %s452_s3 }
  0x34   :  { %535 = vmatpush3.xpose.msra.mxu0 %v90_v1  ;;  %570 = vmatpush3.xpose.msra.mxu1 %v106_v2  ;;  %v103_v8 = vld [vmem:[#allocation5 + $0xe0] sm:$0xff]  ;;  %v102_v10 = vld [vmem:[#allocation5 + $0xd8] sm:$0xff]  ;;  %v85_v11 = vld [vmem:[#allocation5 + $0x50] sm:$0xff]  ;;  %s771_s9 = scalar_lea.vmem %s453_s3, 256  ;;  %p776_p7 = scmp.lt.s32.totalorder %s453_s3, %s453_s3 }
  0x35   :  { %536 = vmatprep.subr.mxu0 %v805_v0  ;;  %571 = vmatprep.subr.mxu1 %v805_v0  ;;  %v101_v12 = vld [vmem:[#allocation5 + $0xd0] sm:$0xff]  ;;  %v84_v13 = vld [vmem:[#allocation5 + $0x48] sm:$0xff]  ;;  %v83_v15 = vld [vmem:[#allocation5 + $0x40] sm:$0xff]  ;;  %p772_p6 = scmp.ne.s32.totalorder %s453_s3, %s771_s9  ;;  %p777_p8 = scmp.lt.s32.totalorder %s771_s9, %s771_s9 }
  0x36   :  { %v100_v14 = vld [vmem:[#allocation5 + $0xc8] sm:$0xff]  ;;  %v99_v16 = vld [vmem:[#allocation5 + $0xc0] sm:$0xff]  ;;  %v82_v17 = vld [vmem:[#allocation5 + $0x38] sm:$0xff] }
  0x37   :  { %v98_v18 = vld [vmem:[#allocation5 + $0xb8] sm:$0xff]  ;;  %v81_v19 = vld [vmem:[#allocation5 + $0x30] sm:$0xff]  ;;  %v80_v21 = vld [vmem:[#allocation5 + $0x28] sm:$0xff]  ;;  %p778_p9 = por %p777_p8, %p776_p7 }
  0x38   :  { %537 = vmatpush3.xpose.msra.mxu0 %v89_v3  ;;  %572 = vmatpush3.xpose.msra.mxu1 %v105_v4  ;;  %v97_v20 = vld [vmem:[#allocation5 + $0xb0] sm:$0xff]  ;;  %v96_v22 = vld [vmem:[#allocation5 + $0xa8] sm:$0xff]  ;;  %v79_v23 = vld [vmem:[#allocation5 + $0x20] sm:$0xff] }
  0x39   :  { %538 = vmatprep.subr.mxu0 %v805_v0  ;;  %573 = vmatprep.subr.mxu1 %v805_v0  ;;  %v95_v24 = vld [vmem:[#allocation5 + $0xa0] sm:$0xff]  ;;  %v78_v25 = vld [vmem:[#allocation5 + $0x18] sm:$0xff]  ;;  %v77_v27 = vld [vmem:[#allocation5 + $0x10] sm:$0xff]  ;;  %p779_p10 = pnand %p778_p9, %p772_p6 }
  0x3a   :  { %v94_v26 = vld [vmem:[#allocation5 + $0x98] sm:$0xff]  ;;  %v93_v28 = vld [vmem:[#allocation5 + $0x90] sm:$0xff]  ;;  %v76_v29 = vld [vmem:[#allocation5 + $0x8] sm:$0xff] }
  0x3b   :  { %v92_v30 = vld [vmem:[#allocation5 + $0x88] sm:$0xff]  ;;  %v75_v31 = vld [vmem:[#allocation5] sm:$0xff]  ;;  %v73_v33 = vld [vmem:[#allocation2] sm:$0xff] }
  0x3c   :  { %539 = vmatpush3.xpose.msra.mxu0 %v88_v5  ;;  %574 = vmatpush3.xpose.msra.mxu1 %v104_v6  ;;  %v91_v32 = vld [vmem:[#allocation5 + $0x80] sm:$0xff]  ;;  %v74_v34 = vld [vmem:[#allocation2 + $0x8] sm:$0xff]  ;;  %v121_v42 = vld [vmem:[#allocation7 + $0x70] sm:$0xff] }
  0x3d   :  { %540 = vmatprep.subr.mxu0 %v805_v0  ;;  %575 = vmatprep.subr.mxu1 %v805_v0  ;;  %v122_v41 = vld [vmem:[#allocation7 + $0x78] sm:$0xff]  ;;  %v137_v44 = vld [vmem:[#allocation7 + $0xf0] sm:$0xff]  ;;  %v120_v45 = vld [vmem:[#allocation7 + $0x68] sm:$0xff] }
  0x3e   :  { %v138_v43 = vld [vmem:[#allocation7 + $0xf8] sm:$0xff]  ;;  %v136_v46 = vld [vmem:[#allocation7 + $0xe8] sm:$0xff]  ;;  %v119_v47 = vld [vmem:[#allocation7 + $0x60] sm:$0xff] }
  0x3f   :  { %v135_v48 = vld [vmem:[#allocation7 + $0xe0] sm:$0xff]  ;;  %v118_v49 = vld [vmem:[#allocation7 + $0x58] sm:$0xff]  ;;  %v117_v50 = vld [vmem:[#allocation7 + $0x50] sm:$0xff] }
  0x40   :  { %541 = vmatpush3.xpose.msra.mxu0 %v87_v7  ;;  %576 = vmatpush3.xpose.msra.mxu1 %v103_v8  ;;  %v116_v59 = vld [vmem:[#allocation7 + $0x48] sm:$0xff]  ;;  %v134_v60 = vld [vmem:[#allocation7 + $0xd8] sm:$0xff]  ;;  %v115_v61 = vld [vmem:[#allocation7 + $0x40] sm:$0xff] }
  0x41   :  { %542 = vmatprep.subr.mxu0 %v805_v0  ;;  %577 = vmatprep.subr.mxu1 %v805_v0  ;;  %v133_v62 = vld [vmem:[#allocation7 + $0xd0] sm:$0xff]  ;;  %v114_v63 = vld [vmem:[#allocation7 + $0x38] sm:$0xff]  ;;  %v132_v1 = vld [vmem:[#allocation7 + $0xc8] sm:$0xff] }
  0x42   :  { %v113_v2 = vld [vmem:[#allocation7 + $0x30] sm:$0xff]  ;;  %v131_v3 = vld [vmem:[#allocation7 + $0xc0] sm:$0xff]  ;;  %v112_v4 = vld [vmem:[#allocation7 + $0x28] sm:$0xff] }
  0x43   :  { %v130_v5 = vld [vmem:[#allocation7 + $0xb8] sm:$0xff]  ;;  %v111_v6 = vld [vmem:[#allocation7 + $0x20] sm:$0xff]  ;;  %v129_v7 = vld [vmem:[#allocation7 + $0xb0] sm:$0xff] }
  0x44   :  { %543 = vmatpush3.xpose.msra.mxu0 %v86_v9  ;;  %578 = vmatpush3.xpose.msra.mxu1 %v102_v10  ;;  %v110_v8 = vld [vmem:[#allocation7 + $0x18] sm:$0xff]  ;;  %v128_v9 = vld [vmem:[#allocation7 + $0xa8] sm:$0xff]  ;;  %v109_v10 = vld [vmem:[#allocation7 + $0x10] sm:$0xff] }
  0x45   :  { %544 = vmatprep.subr.mxu0 %v805_v0  ;;  %579 = vmatprep.subr.mxu1 %v805_v0 }
  0x48   :  { %545 = vmatpush3.xpose.msra.mxu0 %v85_v11  ;;  %580 = vmatpush3.xpose.msra.mxu1 %v101_v12  ;;  %v127_v11 = vld [vmem:[#allocation7 + $0xa0] sm:$0xff]  ;;  %v108_v12 = vld [vmem:[#allocation7 + $0x8] sm:$0xff] }
  0x49   :  { %546 = vmatprep.subr.mxu0 %v805_v0  ;;  %581 = vmatprep.subr.mxu1 %v805_v0 }
  0x4c   :  { %547 = vmatpush3.xpose.msra.mxu0 %v84_v13  ;;  %582 = vmatpush3.xpose.msra.mxu1 %v100_v14  ;;  %v126_v13 = vld [vmem:[#allocation7 + $0x98] sm:$0xff]  ;;  %v107_v14 = vld [vmem:[#allocation7] sm:$0xff] }
  0x4d   :  { %548 = vmatprep.subr.mxu0 %v805_v0  ;;  %583 = vmatprep.subr.mxu1 %v805_v0 }
  0x50   :  { %549 = vmatpush3.xpose.msra.mxu0 %v83_v15  ;;  %584 = vmatpush3.xpose.msra.mxu1 %v99_v16  ;;  %v125_v15 = vld [vmem:[#allocation7 + $0x90] sm:$0xff]  ;;  %v124_v16 = vld [vmem:[#allocation7 + $0x88] sm:$0xff] }
  0x51   :  { %550 = vmatprep.subr.mxu0 %v805_v0  ;;  %585 = vmatprep.subr.mxu1 %v805_v0 }
  0x54   :  { %551 = vmatpush3.xpose.msra.mxu0 %v82_v17  ;;  %586 = vmatpush3.xpose.msra.mxu1 %v98_v18  ;;  %v123_v17 = vld [vmem:[#allocation7 + $0x80] sm:$0xff] }
  0x55   :  { %552 = vmatprep.subr.mxu0 %v805_v0  ;;  %587 = vmatprep.subr.mxu1 %v805_v0 }
  0x58   :  { %553 = vmatpush3.xpose.msra.mxu0 %v81_v19  ;;  %588 = vmatpush3.xpose.msra.mxu1 %v97_v20 }
  0x59   :  { %554 = vmatprep.subr.mxu0 %v805_v0  ;;  %589 = vmatprep.subr.mxu1 %v805_v0 }
  0x5c   :  { %555 = vmatpush3.xpose.msra.mxu0 %v80_v21  ;;  %590 = vmatpush3.xpose.msra.mxu1 %v96_v22  ;;  %v139_v22 = vld [vmem:[#allocation8] sm:$0xff] }
  0x5d   :  { %556 = vmatprep.subr.mxu0 %v805_v0  ;;  %591 = vmatprep.subr.mxu1 %v805_v0 }
  0x60   :  { %557 = vmatpush3.xpose.msra.mxu0 %v79_v23  ;;  %592 = vmatpush3.xpose.msra.mxu1 %v95_v24 }
  0x61   :  { %558 = vmatprep.subr.mxu0 %v805_v0  ;;  %593 = vmatprep.subr.mxu1 %v805_v0 }
  0x64   :  { %559 = vmatpush3.xpose.msra.mxu0 %v78_v25  ;;  %594 = vmatpush3.xpose.msra.mxu1 %v94_v26 }
  0x65   :  { %560 = vmatprep.subr.mxu0 %v805_v0  ;;  %595 = vmatprep.subr.mxu1 %v805_v0 }
  0x68   :  { %561 = vmatpush3.xpose.msra.mxu0 %v77_v27  ;;  %596 = vmatpush3.xpose.msra.mxu1 %v93_v28  ;;  %v140_v27 = vld [vmem:[#allocation8 + $0x8] sm:$0xff] }
  0x69   :  { %562 = vmatprep.subr.mxu0 %v805_v0  ;;  %597 = vmatprep.subr.mxu1 %v805_v0 }
  0x6c   :  { %563 = vmatpush3.xpose.msra.mxu0 %v76_v29  ;;  %598 = vmatpush3.xpose.msra.mxu1 %v92_v30 }
  0x6d   :  { %564 = vmatprep.subr.mxu0 %v805_v0  ;;  %599 = vmatprep.subr.mxu1 %v805_v0 }
  0x70   :  { %565 = vmatpush3.xpose.msra.mxu0 %v75_v31  ;;  %600 = vmatpush3.xpose.msra.mxu1 %v91_v32 }
  0x71   :  { %604 = vmatprep.subr.mxu0 %v805_v0  ;;  %639 = vmatprep.subr.mxu1 %v805_v0 }
  0x73   :  { %567 = vmatmul.mubr.f32.vlgmr.msra.gmra.mxu0 %v73_v33  ;;  %602 = vmatmul.mubr.f32.vlgmr.msra.gmra.mxu1 %v74_v34 }
  0x74   :  { %636 = vmatprep.mubr.msk.f32.mxu0 %vm806_vm0, %v805_v0  ;;  %671 = vmatprep.mubr.msk.f32.mxu1 %vm806_vm0, %v805_v0 }
  0x75   :  { %605 = vmatpush3.msra.mxu0 %v122_v41  ;;  %640 = vmatpush3.msra.mxu1 %v138_v43 }
  0x76   :  { %606 = vmatprep.subr.mxu0 %v805_v0  ;;  %641 = vmatprep.subr.mxu1 %v805_v0 }
  0x77   :  { %607 = vmatpush3.msra.mxu0 %v121_v42  ;;  %642 = vmatpush3.msra.mxu1 %v137_v44 }
  0x78   :  { %608 = vmatprep.subr.mxu0 %v805_v0  ;;  %643 = vmatprep.subr.mxu1 %v805_v0 }
  0x79   :  { %609 = vmatpush3.msra.mxu0 %v120_v45  ;;  %644 = vmatpush3.msra.mxu1 %v136_v46 }
  0x7a   :  { %610 = vmatprep.subr.mxu0 %v805_v0  ;;  %645 = vmatprep.subr.mxu1 %v805_v0 }
  0x7b   :  { %611 = vmatpush3.msra.mxu0 %v119_v47  ;;  %646 = vmatpush3.msra.mxu1 %v135_v48 }
  0x7c   :  { %612 = vmatprep.subr.mxu0 %v805_v0  ;;  %647 = vmatprep.subr.mxu1 %v805_v0 }
  0x7d   :  { %613 = vmatpush3.msra.mxu0 %v118_v49  ;;  %648 = vmatpush3.msra.mxu1 %v134_v60 }
  0x7e   :  { %614 = vmatprep.subr.mxu0 %v805_v0  ;;  %649 = vmatprep.subr.mxu1 %v805_v0 }
  0x7f   :  { %615 = vmatpush3.msra.mxu0 %v117_v50  ;;  %650 = vmatpush3.msra.mxu1 %v133_v62 }
  0x80   :  { %616 = vmatprep.subr.mxu0 %v805_v0  ;;  %651 = vmatprep.subr.mxu1 %v805_v0 }
  0x81   :  { %617 = vmatpush3.msra.mxu0 %v116_v59  ;;  %652 = vmatpush3.msra.mxu1 %v132_v1 }
  0x82   :  { %618 = vmatprep.subr.mxu0 %v805_v0  ;;  %653 = vmatprep.subr.mxu1 %v805_v0 }
  0x83   :  { %619 = vmatpush3.msra.mxu0 %v115_v61  ;;  %654 = vmatpush3.msra.mxu1 %v131_v3 }
  0x84   :  { %620 = vmatprep.subr.mxu0 %v805_v0  ;;  %655 = vmatprep.subr.mxu1 %v805_v0 }
  0x85   :  { %621 = vmatpush3.msra.mxu0 %v114_v63  ;;  %656 = vmatpush3.msra.mxu1 %v130_v5 }
  0x86   :  { %622 = vmatprep.subr.mxu0 %v805_v0  ;;  %657 = vmatprep.subr.mxu1 %v805_v0 }
  0x87   :  { %623 = vmatpush3.msra.mxu0 %v113_v2  ;;  %658 = vmatpush3.msra.mxu1 %v129_v7 }
  0x88   :  { %624 = vmatprep.subr.mxu0 %v805_v0  ;;  %659 = vmatprep.subr.mxu1 %v805_v0 }
  0x89   :  { %625 = vmatpush3.msra.mxu0 %v112_v4  ;;  %660 = vmatpush3.msra.mxu1 %v128_v9 }
  0x8a   :  { %626 = vmatprep.subr.mxu0 %v805_v0  ;;  %661 = vmatprep.subr.mxu1 %v805_v0 }
  0x8b   :  { %627 = vmatpush3.msra.mxu0 %v111_v6  ;;  %662 = vmatpush3.msra.mxu1 %v127_v11 }
  0x8c   :  { %628 = vmatprep.subr.mxu0 %v805_v0  ;;  %663 = vmatprep.subr.mxu1 %v805_v0 }
  0x8d   :  { %629 = vmatpush3.msra.mxu0 %v110_v8  ;;  %664 = vmatpush3.msra.mxu1 %v126_v13 }
  0x8e   :  { %630 = vmatprep.subr.mxu0 %v805_v0  ;;  %665 = vmatprep.subr.mxu1 %v805_v0 }
  0x8f   :  { %631 = vmatpush3.msra.mxu0 %v109_v10  ;;  %666 = vmatpush3.msra.mxu1 %v125_v15 }
  0x90   :  { %632 = vmatprep.subr.mxu0 %v805_v0  ;;  %667 = vmatprep.subr.mxu1 %v805_v0 }
  0x91   :  { %633 = vmatpush3.msra.mxu0 %v108_v12  ;;  %668 = vmatpush3.msra.mxu1 %v124_v16 }
  0x92   :  { %634 = vmatprep.subr.mxu0 %v805_v0  ;;  %669 = vmatprep.subr.mxu1 %v805_v0 }
  0x93   :  { %635 = vmatpush3.msra.mxu0 %v107_v14  ;;  %670 = vmatpush3.msra.mxu1 %v123_v17 }
 0x133   :  { %v207_v35 = vpop.f32.mrf.mxu0  ;;  %v277_v36 = vpop.f32.mrf.mxu1 }
 0x134   :  { %v281_v37 = vmul.f32 11.313708, %v207_v35  ;;  %v282_v40 = vmul.f32 11.313708, %v277_v36 }
 0x135   :  { %v568_v38 = vpop.f32.mrf.mxu0  ;;  %v603_v39 = vpop.f32.mrf.mxu1 }
 0x136   :  { %283 = vmax.xlane.f32.xlu0 %v281_v37 }
 0x13a   :  { %285 = vmax.xlane.f32.xlu0 %v282_v40 }
 0x1bf   :  { %v284_v51 = vpop.xlane.xlu0 %283 }
 0x1c0   :  { %v287_v52 = vsub.f32 %v281_v37, %v284_v51 }
 0x1c2   :  { %v289_v53 = vmul.f32 1.442695, %v287_v52 }
 0x1c3   :  { %v286_v54 = vpop.xlane.xlu0 %285 }
 0x1c4   :  { %683 = vpow2.f32 %v289_v53  ;;  %v288_v55 = vsub.f32 %v282_v40, %v286_v54 }
 0x1c6   :  { %v291_v56 = vmul.f32 1.442695, %v288_v55 }
 0x1c8   :  { %685 = vpow2.f32 %v291_v56 }
 0x1d1   :  { %v909_v57 = vpop.eup %683 }
 0x1d2   :  { %293 = vadd.xlane.f32.xlu1 %v909_v57 }
 0x1d5   :  { %v912_v58 = vpop.eup %685 }
 0x1d6   :  { %295 = vadd.xlane.f32.xlu1 %v912_v58 }
 0x25b   :  { %v294_v18 = vpop.xlane.xlu1 %293 }
 0x25c   :  { %687 = vrcp.f32 %v294_v18 }
 0x25f   :  { %v296_v19 = vpop.xlane.xlu1 %295 }
 0x260   :  { %689 = vrcp.f32 %v296_v19 }
 0x269   :  { %v688_v20 = vpop.eup %687 }
 0x26a   :  { %v298_v21 = vmul.f32 1.1111112, %v688_v20 }
 0x26c   :  { %v301_v23 = vmul.f32 %v909_v57, %v298_v21 }
 0x26d   :  { %v690_v24 = vpop.eup %689 }
 0x26e   :  { %v300_v25 = vmul.f32 1.1111112, %v690_v24  ;;  %v303_v26 = vmul.f32 %v301_v23, %v139_v22 }
 0x270   :  { %v302_v28 = vmul.f32 %v912_v58, %v300_v25  ;;  %637 = vmatmul.mubr.f32.vlgmr.msra.gmra.mxu0 %v303_v26 }
 0x272   :  { %v304_v29 = vmul.f32 %v302_v28, %v140_v27 }
 0x274   :  { %672 = vmatmul.mubr.f32.vlgmr.msra.gmra.mxu1 %v304_v29 }
 0x330   :  { %v371_v0 = vpop.f32.mrf.mxu0 }
 0x331   :  { %445 = vst [vmem:[#allocation10] sm:$0xff] %v371_v0 }
 0x332   :  { %v638_v30 = vpop.f32.mrf.mxu0 }
 0x334   :  { %v441_v31 = vpop.f32.mrf.mxu1 }
 0x335   :  { %446 = vst [vmem:[#allocation10 + $0x8] sm:$0xff] %v441_v31 }
 0x336   :  { %v673_v32 = vpop.f32.mrf.mxu1 }
 0x337   :  { %782 = shalt.err (!%p779_p10)
}
 0x338   :  { %458 = dma.vmem_to_hbm [thread:$0]  %s453_s3, 256, %s947_s4, [#allocation4], %s801_s20, %s801_s20, %s802_s21  }
 0x339   :  { %797 = dma.done.wait [#allocation4], 256  }
 0x33a   :  { %798 = vsyncadd [#allocation4], 4294967040 }
 0x33b   :  { %462 = vsyncpa [#allocation3], 1 }
 0x33c   :  { %463 = vsyncpa [#allocation6], 1 }
 0x33d   :  { %464 = vsyncpa [#allocation9], 1 }
 0x33e   :  { %465 = vsyncpa [#allocation4], 1 }

</bundles_post_ra>
